<compile_context>
chip_gen: v7x
topology: tpu7x:2x2x1
jax: 0.10.0
libtpu: 0.0.40
codegen_flags: <defaults>
</compile_context>

<pallas_src>
import jax
import jax.numpy as jnp
from jax.experimental import pallas as pl
from jax.experimental.pallas import tpu as pltpu

_LANE = 128
_SUBLANE = 8


def _round_up(n, m):
    return ((n + m - 1) // m) * m


def _round_down_min(n, m):
    """Round n down to a multiple of m, but never below m."""
    return max((n // m) * m, m)


# ----------------------------------------------------------------------------
# Kernels
# ----------------------------------------------------------------------------
def _fc_resident_kernel(x_ref, w1_ref, b1_ref, w2_ref, b2_ref, o_ref):
    """Fast path: whole reduction per grid step, weights VMEM-resident.

    x_ref  : (bt, in_pad)
    w1_ref : (in_pad, hidden)   b1_ref : (1, hidden)
    w2_ref : (hidden, out_pad)  b2_ref : (1, out_pad)
    o_ref  : (bt, out_pad)
    """
    h = jnp.dot(x_ref[...], w1_ref[...], preferred_element_type=jnp.float32)
    h = h + b1_ref[...]
    out = jnp.dot(h, w2_ref[...], preferred_element_type=jnp.float32)
    o_ref[...] = (out + b2_ref[...]).astype(o_ref.dtype)


def _fc_ktiled_kernel(x_ref, w1_ref, b1_ref, w2_ref, b2_ref, o_ref, h_acc):
    """Fallback path: in_ch reduction tiled over grid axis 1 (last / arbitrary).

    x_ref  : (bt, tk)          w1_ref : (tk, hidden)
    h_acc  : VMEM f32 (bt, hidden) accumulator across k tiles.
    """
    k = pl.program_id(1)

    @pl.when(k == 0)
    def _():
        h_acc[...] = jnp.zeros_like(h_acc)

    h_acc[...] += jnp.dot(x_ref[...], w1_ref[...],
                          preferred_element_type=jnp.float32)

    @pl.when(k == pl.num_programs(1) - 1)
    def _():
        h = h_acc[...] + b1_ref[...]
        out = jnp.dot(h, w2_ref[...], preferred_element_type=jnp.float32)
        o_ref[...] = (out + b2_ref[...]).astype(o_ref.dtype)


# ----------------------------------------------------------------------------
# Wrapper
# ----------------------------------------------------------------------------
def fc_forward(params, x, *,
               x_tile_bytes=4 << 20,          # target bytes of one x tile
               w1_tile_bytes=4 << 20,         # cap on one w1 tile (k-tiled path)
               out_tile_bytes=2 << 20,        # cap on one output tile
               w_resident_budget=12 << 20,    # single-buffer weight budget
               vmem_limit_bytes=48 << 20):    # safe on v5e/v6e (128M) & v7x (64M)
    """params: w1 (in_ch, hidden), b1 (hidden,), w2 (hidden, out_ch), b2 (out_ch,).
    x: any shape with leading batch dim (flattened like PyTorch x.view(B, -1))."""
    B = x.shape[0]
    x2d = x.reshape(B, -1).astype(jnp.float32)        # the `view` — free reshape
    in_ch = x2d.shape[1]

    w1 = params["w1"].astype(jnp.float32)
    b1 = params["b1"].astype(jnp.float32)
    w2 = params["w2"].astype(jnp.float32)
    b2 = params["b2"].astype(jnp.float32)
    hidden = w1.shape[1]
    out_ch = w2.shape[1]
    assert w1.shape[0] == in_ch and w2.shape[0] == hidden

    # ---- lane-dense output: pad out_ch to a multiple of 128 ----------------
    out_pad = _round_up(out_ch, _LANE)
    if out_pad != out_ch:
        w2 = jnp.pad(w2, ((0, 0), (0, out_pad - out_ch)))
        b2 = jnp.pad(b2, (0, out_pad - out_ch))

    # ---- choose path & tiles (bytes-budgeted, never "full extent" fallback) -
    in_pad = _round_up(in_ch, _LANE)
    w_bytes = 4 * (in_pad * hidden + hidden * out_pad + hidden + out_pad)
    resident = w_bytes <= w_resident_budget

    if resident:
        tk = in_pad                                        # whole reduction
        rows = _round_down_min(x_tile_bytes // (4 * in_pad), _SUBLANE)
        bt = min(rows, _round_up(B, _SUBLANE))
        bt = min(bt, _round_down_min(out_tile_bytes // (4 * out_pad), _SUBLANE))
    else:
        bt = min(256, _round_up(B, _SUBLANE))
        tk = min(x_tile_bytes // (4 * bt), w1_tile_bytes // (4 * hidden))
        tk = min(_round_down_min(tk, _LANE), in_pad)
        in_pad = _round_up(in_ch, tk)                      # make tk divide in_pad

    B_pad = _round_up(B, bt)

    # ---- zero-pad operands to the padded extents (mathematically inert) ----
    if (B_pad, in_pad) != (B, in_ch):
        x2d = jnp.pad(x2d, ((0, B_pad - B), (0, in_pad - in_ch)))
    if in_pad != in_ch:
        w1 = jnp.pad(w1, ((0, in_pad - in_ch), (0, 0)))
    b1r = b1.reshape(1, hidden)
    b2r = b2.reshape(1, out_pad)

    n_bt = B_pad // bt
    n_kt = in_pad // tk

    # ---- cost estimate (counts w1 re-reads on the k-tiled path) ------------
    flops = 2 * B * in_ch * hidden + 2 * B * hidden * out_ch
    w1_reads = 1 if resident else n_bt
    bytes_accessed = 4 * (B_pad * in_pad
                          + w1_reads * in_pad * hidden
                          + hidden + hidden * out_pad + out_pad
                          + B_pad * out_pad)
    cost = pl.CostEstimate(flops=flops, transcendentals=0,
                           bytes_accessed=bytes_accessed)

    if resident:
        compiler_params = pltpu.CompilerParams(
            dimension_semantics=("parallel",),
            vmem_limit_bytes=vmem_limit_bytes)
        out = pl.pallas_call(
            _fc_resident_kernel,
            out_shape=jax.ShapeDtypeStruct((B_pad, out_pad), jnp.float32),
            grid_spec=pltpu.PrefetchScalarGridSpec(
                num_scalar_prefetch=0,
                grid=(n_bt,),
                in_specs=[
                    pl.BlockSpec((bt, in_pad), lambda b: (b, 0)),        # x
                    pl.BlockSpec((in_pad, hidden), lambda b: (0, 0)),    # w1 (resident)
                    pl.BlockSpec((1, hidden), lambda b: (0, 0)),         # b1
                    pl.BlockSpec((hidden, out_pad), lambda b: (0, 0)),   # w2
                    pl.BlockSpec((1, out_pad), lambda b: (0, 0)),        # b2
                ],
                out_specs=pl.BlockSpec((bt, out_pad), lambda b: (b, 0)),
            ),
            compiler_params=compiler_params,
            cost_estimate=cost,
        )(x2d, w1, b1r, w2, b2r)
    else:
        compiler_params = pltpu.CompilerParams(
            dimension_semantics=("parallel", "arbitrary"),
            vmem_limit_bytes=vmem_limit_bytes)
        out = pl.pallas_call(
            _fc_ktiled_kernel,
            out_shape=jax.ShapeDtypeStruct((B_pad, out_pad), jnp.float32),
            grid_spec=pltpu.PrefetchScalarGridSpec(
                num_scalar_prefetch=0,
                grid=(n_bt, n_kt),
                in_specs=[
                    pl.BlockSpec((bt, tk), lambda b, k: (b, k)),          # x
                    pl.BlockSpec((tk, hidden), lambda b, k: (k, 0)),      # w1
                    pl.BlockSpec((1, hidden), lambda b, k: (0, 0)),       # b1
                    pl.BlockSpec((hidden, out_pad), lambda b, k: (0, 0)), # w2
                    pl.BlockSpec((1, out_pad), lambda b, k: (0, 0)),      # b2
                ],
                out_specs=pl.BlockSpec((bt, out_pad), lambda b, k: (b, 0)),
                scratch_shapes=[pltpu.VMEM((bt, hidden), jnp.float32)],
            ),
            compiler_params=compiler_params,
            cost_estimate=cost,
        )(x2d, w1, b1r, w2, b2r)

    # strip batch / lane padding
    return out[:B, :out_ch]


# ----------------------------------------------------------------------------
# Pure-JAX reference (PyTorch semantics; weights stored pre-transposed)
# ----------------------------------------------------------------------------
def reference_forward(params, x):
    B = x.shape[0]
    h = x.reshape(B, -1).astype(jnp.float32) @ params["w1"] + params["b1"]
    return h @ params["w2"] + params["b2"]


# ----------------------------------------------------------------------------
if __name__ == "__main__":
    key = jax.random.PRNGKey(0)
    kx, k1, k2, k3, k4 = jax.random.split(key, 5)

    # Shapes implied by the module: flatten makes in_ch the feature count of
    # one example.  batch=2, channels=4, spatial=16 -> in_ch=1024,
    # hidden = in_ch // 64 = 16, out_ch = 32.
    B, C, H, W = 2, 4, 16, 16
    in_ch = C * H * W
    hidden = in_ch // 64
    out_ch = 32

    x = jax.random.normal(kx, (B, C, H, W), jnp.float32)
    params = {
        "w1": 0.05 * jax.random.normal(k1, (in_ch, hidden), jnp.float32),
        "b1": 0.05 * jax.random.normal(k2, (hidden,), jnp.float32),
        "w2": 0.05 * jax.random.normal(k3, (hidden, out_ch), jnp.float32),
        "b2": 0.05 * jax.random.normal(k4, (out_ch,), jnp.float32),
    }

    ref = reference_forward(params, x)

    # Fast path: weights VMEM-resident, single grid step for the whole forward.
    out = jax.block_until_ready(fc_forward(params, x))
    assert out.shape == (B, out_ch), out.shape
    assert jnp.allclose(out, ref, rtol=1e-4, atol=1e-5), \
        float(jnp.max(jnp.abs(out - ref)))

    # Also exercise the k-tiled fallback (used when w1 exceeds the VMEM budget).
    out_kt = jax.block_until_ready(
        fc_forward(params, x, w_resident_budget=0, x_tile_bytes=4096))
    assert out_kt.shape == (B, out_ch), out_kt.shape
    assert jnp.allclose(out_kt, ref, rtol=1e-4, atol=1e-5), \
        float(jnp.max(jnp.abs(out_kt - ref)))

    print("KERNEL_OK")
</pallas_src>

<mosaic_0001>
module attributes {stable_mosaic.version = 11 : i64} {
  func.func @_fc_resident_kernel(%arg0: i32, %arg1: memref<8x1024xf32, #tpu.memory_space<vmem>>, %arg2: memref<1024x16xf32, #tpu.memory_space<vmem>>, %arg3: memref<1x16xf32, #tpu.memory_space<vmem>>, %arg4: memref<16x128xf32, #tpu.memory_space<vmem>>, %arg5: memref<1x128xf32, #tpu.memory_space<vmem>>, %arg6: memref<8x128xf32, #tpu.memory_space<vmem>>) attributes {dimension_semantics = [#tpu.dimension_semantics<parallel>], iteration_bounds = array<i64: 1>, scalar_prefetch = 0 : i64, scratch_operands = 0 : i64, tpu.core_type = #tpu.core_type<tc>, window_params = [{transform_indices = @transform_0, window_bounds = array<i64: 8, 1024>}, {pipeline_mode = #tpu.pipeline_mode<synchronous>, transform_indices = @transform_1, window_bounds = array<i64: 1024, 16>}, {pipeline_mode = #tpu.pipeline_mode<synchronous>, transform_indices = @transform_2, window_bounds = array<i64: 1, 16>}, {pipeline_mode = #tpu.pipeline_mode<synchronous>, transform_indices = @transform_3, window_bounds = array<i64: 16, 128>}, {pipeline_mode = #tpu.pipeline_mode<synchronous>, transform_indices = @transform_4, window_bounds = array<i64: 1, 128>}, {transform_indices = @transform_5, window_bounds = array<i64: 8, 128>}]} {
    %c0 = arith.constant 0 : index
    %c0_0 = arith.constant 0 : index
    %0 = vector.load %arg1[%c0, %c0_0] : memref<8x1024xf32, #tpu.memory_space<vmem>>, vector<8x1024xf32>
    %c0_1 = arith.constant 0 : index
    %c0_2 = arith.constant 0 : index
    %1 = vector.load %arg2[%c0_1, %c0_2] : memref<1024x16xf32, #tpu.memory_space<vmem>>, vector<1024x16xf32>
    %cst = arith.constant dense<0.000000e+00> : vector<8x16xf32>
    %2 = tpu.matmul %0, %1, %cst {dimension_numbers = #tpu.dot_dimension_numbers<[1], [0], [0], [1], [0, 0, 1, 1], [], []>} : vector<8x1024xf32>, vector<1024x16xf32>, vector<8x16xf32> -> vector<8x16xf32>
    %c0_3 = arith.constant 0 : index
    %c0_4 = arith.constant 0 : index
    %3 = vector.load %arg3[%c0_3, %c0_4] : memref<1x16xf32, #tpu.memory_space<vmem>>, vector<1x16xf32>
    %4 = vector.broadcast %3 : vector<1x16xf32> to vector<8x16xf32>
    %5 = arith.addf %2, %4 : vector<8x16xf32>
    %c0_5 = arith.constant 0 : index
    %c0_6 = arith.constant 0 : index
    %6 = vector.load %arg4[%c0_5, %c0_6] : memref<16x128xf32, #tpu.memory_space<vmem>>, vector<16x128xf32>
    %cst_7 = arith.constant dense<0.000000e+00> : vector<8x128xf32>
    %7 = tpu.matmul %5, %6, %cst_7 {dimension_numbers = #tpu.dot_dimension_numbers<[1], [0], [0], [1], [0, 0, 1, 1], [], []>} : vector<8x16xf32>, vector<16x128xf32>, vector<8x128xf32> -> vector<8x128xf32>
    %c0_8 = arith.constant 0 : index
    %c0_9 = arith.constant 0 : index
    %8 = vector.load %arg5[%c0_8, %c0_9] : memref<1x128xf32, #tpu.memory_space<vmem>>, vector<1x128xf32>
    %9 = vector.broadcast %8 : vector<1x128xf32> to vector<8x128xf32>
    %10 = arith.addf %7, %9 : vector<8x128xf32>
    %c0_10 = arith.constant 0 : index
    %c0_11 = arith.constant 0 : index
    %11 = vector.load %arg6[%c0_10, %c0_11] : memref<8x128xf32, #tpu.memory_space<vmem>>, vector<8x128xf32>
    tpu.vector_store %arg6[%c0_10, %c0_11], %10 {strides = array<i32>} : memref<8x128xf32, #tpu.memory_space<vmem>>, vector<8x128xf32>,
    return
  }
  func.func @transform_0(%arg0: i32) -> (i32, i32) {
    %c0_i32 = arith.constant 0 : i32
    %c0_i32_0 = arith.constant 0 : i32
    return %arg0, %c0_i32 : i32, i32
  }
  func.func @transform_1(%arg0: i32) -> (i32, i32) {
    %c0_i32 = arith.constant 0 : i32
    %c0_i32_0 = arith.constant 0 : i32
    %c0_i32_1 = arith.constant 0 : i32
    return %c0_i32, %c0_i32_0 : i32, i32
  }
  func.func @transform_2(%arg0: i32) -> (i32, i32) {
    %c0_i32 = arith.constant 0 : i32
    %c0_i32_0 = arith.constant 0 : i32
    %c0_i32_1 = arith.constant 0 : i32
    return %c0_i32, %c0_i32_0 : i32, i32
  }
  func.func @transform_3(%arg0: i32) -> (i32, i32) {
    %c0_i32 = arith.constant 0 : i32
    %c0_i32_0 = arith.constant 0 : i32
    %c0_i32_1 = arith.constant 0 : i32
    return %c0_i32, %c0_i32_0 : i32, i32
  }
  func.func @transform_4(%arg0: i32) -> (i32, i32) {
    %c0_i32 = arith.constant 0 : i32
    %c0_i32_0 = arith.constant 0 : i32
    %c0_i32_1 = arith.constant 0 : i32
    return %c0_i32, %c0_i32_0 : i32, i32
  }
  func.func @transform_5(%arg0: i32) -> (i32, i32) {
    %c0_i32 = arith.constant 0 : i32
    %c0_i32_0 = arith.constant 0 : i32
    return %arg0, %c0_i32 : i32, i32
  }
}

</mosaic_0001>

<bundles_post_ra>
// kernel: tpu_custom_call.1
= control target key start
LH: loop header
LB: loop body
LE: loop exit
PB: predicated region body
PF: predicated region fallthrough
CT: control target
= control target key end

     0   :  { %s1320_s0 = inlined_call_operand.vmem [shape: f32[8,1024], index: 0, kind: input, shape index: {}]   ;;  %s1321_s1 = inlined_call_operand.vmem [shape: f32[1024,16], index: 1, kind: input, shape index: {}]   ;;  %s1322_s2 = inlined_call_operand.vmem [shape: f32[1,16], index: 2, kind: input, shape index: {}]   ;;  %s1323_s3 = inlined_call_operand.vmem [shape: f32[16,128], index: 3, kind: input, shape index: {}]   ;;  %s1324_s4 = inlined_call_operand.vmem [shape: f32[1,128], index: 4, kind: input, shape index: {}]   ;;  %s1325_s5 = inlined_call_operand.hbm [shape: f32[8,128], index: 5, kind: output, shape index: {}]  }
   0x1   :  { %v45_v0 = vld [vmem:[%s1321_s1 + $0x80] sm:$0xff]  ;;  %v46_v1 = vld [vmem:[%s1321_s1 + $0x88] sm:$0xff]  ;;  %v47_v11 = vld [vmem:[%s1321_s1 + $0x90] sm:$0xff] }
   0x2   :  { %v29_v2 = vld [vmem:[%s1321_s1] sm:$0xff]  ;;  %v695_v3 = vpack.c.bf16 %v46_v1, %v45_v0  ;;  %v30_v4 = vld [vmem:[%s1321_s1 + $0x8] sm:$0xff]  ;;  %v48_v13 = vld [vmem:[%s1321_s1 + $0x98] sm:$0xff] }
   0x3   :  { %v77_v5 = vld [vmem:[%s1321_s1 + $0x180] sm:$0xff]  ;;  %v78_v6 = vld [vmem:[%s1321_s1 + $0x188] sm:$0xff]  ;;  %v697_v7 = vpack.c.bf16 %v30_v4, %v29_v2  ;;  %v31_v14 = vld [vmem:[%s1321_s1 + $0x10] sm:$0xff]  ;;  %v699_v16 = vpack.c.bf16 %v48_v13, %v47_v11 }
   0x4   :  { %v727_v8 = vpack.c.bf16 %v78_v6, %v77_v5  ;;  %v61_v9 = vld [vmem:[%s1321_s1 + $0x100] sm:$0xff]  ;;  %v62_v10 = vld [vmem:[%s1321_s1 + $0x108] sm:$0xff]  ;;  %696 = vmatprep.subr.bf16.mxu0 %v695_v3  ;;  %v32_v15 = vld [vmem:[%s1321_s1 + $0x18] sm:$0xff] }
   0x5   :  { %v729_v12 = vpack.c.bf16 %v62_v10, %v61_v9  ;;  %698 = vmatpush3.bf16.msra.mxu0 %v697_v7  ;;  %v701_v17 = vpack.c.bf16 %v32_v15, %v31_v14  ;;  %v79_v18 = vld [vmem:[%s1321_s1 + $0x190] sm:$0xff]  ;;  %v80_v19 = vld [vmem:[%s1321_s1 + $0x198] sm:$0xff]  ;;  %v49_v23 = vld [vmem:[%s1321_s1 + $0xa0] sm:$0xff] }
   0x6   :  { %728 = vmatprep.subr.bf16.mxu1 %v727_v8  ;;  %v63_v20 = vld [vmem:[%s1321_s1 + $0x110] sm:$0xff]  ;;  %v731_v21 = vpack.c.bf16 %v80_v19, %v79_v18  ;;  %v64_v22 = vld [vmem:[%s1321_s1 + $0x118] sm:$0xff]  ;;  %v50_v24 = vld [vmem:[%s1321_s1 + $0xa8] sm:$0xff]  ;;  %700 = vmatprep.subr.bf16.mxu0 %v699_v16 }
   0x7   :  { %730 = vmatpush3.bf16.msra.mxu1 %v729_v12  ;;  %v733_v25 = vpack.c.bf16 %v64_v22, %v63_v20  ;;  %v703_v26 = vpack.c.bf16 %v50_v24, %v49_v23  ;;  %v33_v27 = vld [vmem:[%s1321_s1 + $0x20] sm:$0xff]  ;;  %v34_v28 = vld [vmem:[%s1321_s1 + $0x28] sm:$0xff]  ;;  %v51_v35 = vld [vmem:[%s1321_s1 + $0xb0] sm:$0xff] }
   0x8   :  { %v81_v29 = vld [vmem:[%s1321_s1 + $0x1a0] sm:$0xff]  ;;  %732 = vmatprep.subr.bf16.mxu1 %v731_v21  ;;  %v82_v30 = vld [vmem:[%s1321_s1 + $0x1a8] sm:$0xff]  ;;  %v705_v33 = vpack.c.bf16 %v34_v28, %v33_v27  ;;  %v52_v36 = vld [vmem:[%s1321_s1 + $0xb8] sm:$0xff] }
   0x9   :  { %v65_v31 = vld [vmem:[%s1321_s1 + $0x120] sm:$0xff]  ;;  %v66_v32 = vld [vmem:[%s1321_s1 + $0x128] sm:$0xff]  ;;  %702 = vmatpush3.bf16.msra.mxu0 %v701_v17  ;;  %v735_v34 = vpack.c.bf16 %v82_v30, %v81_v29  ;;  %v35_v37 = vld [vmem:[%s1321_s1 + $0x30] sm:$0xff]  ;;  %v707_v39 = vpack.c.bf16 %v52_v36, %v51_v35 }
   0xa   :  { %704 = vmatprep.subr.bf16.mxu0 %v703_v26  ;;  %v737_v38 = vpack.c.bf16 %v66_v32, %v65_v31  ;;  %v36_v40 = vld [vmem:[%s1321_s1 + $0x38] sm:$0xff]  ;;  %v83_v41 = vld [vmem:[%s1321_s1 + $0x1b0] sm:$0xff]  ;;  %v53_v46 = vld [vmem:[%s1321_s1 + $0xc0] sm:$0xff] }
   0xb   :  { %734 = vmatpush3.bf16.msra.mxu1 %v733_v25  ;;  %v84_v42 = vld [vmem:[%s1321_s1 + $0x1b8] sm:$0xff]  ;;  %v67_v44 = vld [vmem:[%s1321_s1 + $0x130] sm:$0xff]  ;;  %v54_v47 = vld [vmem:[%s1321_s1 + $0xc8] sm:$0xff]  ;;  %v709_v48 = vpack.c.bf16 %v36_v40, %v35_v37 }
   0xc   :  { %736 = vmatprep.subr.bf16.mxu1 %v735_v34  ;;  %v739_v43 = vpack.c.bf16 %v84_v42, %v83_v41  ;;  %v68_v45 = vld [vmem:[%s1321_s1 + $0x138] sm:$0xff]  ;;  %v85_v49 = vld [vmem:[%s1321_s1 + $0x1c0] sm:$0xff]  ;;  %v86_v50 = vld [vmem:[%s1321_s1 + $0x1c8] sm:$0xff]  ;;  %v711_v52 = vpack.c.bf16 %v54_v47, %v53_v46 }
   0xd   :  { %706 = vmatpush3.bf16.msra.mxu0 %v705_v33  ;;  %v741_v51 = vpack.c.bf16 %v68_v45, %v67_v44  ;;  %v37_v53 = vld [vmem:[%s1321_s1 + $0x40] sm:$0xff]  ;;  %v38_v54 = vld [vmem:[%s1321_s1 + $0x48] sm:$0xff]  ;;  %v743_v56 = vpack.c.bf16 %v86_v50, %v85_v49  ;;  %v55_v58 = vld [vmem:[%s1321_s1 + $0xd0] sm:$0xff] }
   0xe   :  { %708 = vmatprep.subr.bf16.mxu0 %v707_v39  ;;  %v69_v55 = vld [vmem:[%s1321_s1 + $0x140] sm:$0xff]  ;;  %v70_v57 = vld [vmem:[%s1321_s1 + $0x148] sm:$0xff]  ;;  %v56_v59 = vld [vmem:[%s1321_s1 + $0xd8] sm:$0xff]  ;;  %v713_v62 = vpack.c.bf16 %v38_v54, %v37_v53 }
   0xf   :  { %738 = vmatpush3.bf16.msra.mxu1 %v737_v38  ;;  %v87_v60 = vld [vmem:[%s1321_s1 + $0x1d0] sm:$0xff]  ;;  %v88_v61 = vld [vmem:[%s1321_s1 + $0x1d8] sm:$0xff]  ;;  %v745_v63 = vpack.c.bf16 %v70_v57, %v69_v55  ;;  %v715_v0 = vpack.c.bf16 %v56_v59, %v55_v58  ;;  %v57_v6 = vld [vmem:[%s1321_s1 + $0xe0] sm:$0xff] }
  0x10   :  { %740 = vmatprep.subr.bf16.mxu1 %v739_v43  ;;  %v39_v1 = vld [vmem:[%s1321_s1 + $0x50] sm:$0xff]  ;;  %v40_v2 = vld [vmem:[%s1321_s1 + $0x58] sm:$0xff]  ;;  %v747_v4 = vpack.c.bf16 %v88_v61, %v87_v60  ;;  %v58_v7 = vld [vmem:[%s1321_s1 + $0xe8] sm:$0xff] }
  0x11   :  { %710 = vmatpush3.bf16.msra.mxu0 %v709_v48  ;;  %v71_v3 = vld [vmem:[%s1321_s1 + $0x150] sm:$0xff]  ;;  %v72_v5 = vld [vmem:[%s1321_s1 + $0x158] sm:$0xff]  ;;  %v89_v8 = vld [vmem:[%s1321_s1 + $0x1e0] sm:$0xff]  ;;  %v717_v10 = vpack.c.bf16 %v40_v2, %v39_v1  ;;  %v719_v14 = vpack.c.bf16 %v58_v7, %v57_v6 }
  0x12   :  { %712 = vmatprep.subr.bf16.mxu0 %v711_v52  ;;  %v90_v9 = vld [vmem:[%s1321_s1 + $0x1e8] sm:$0xff]  ;;  %v41_v11 = vld [vmem:[%s1321_s1 + $0x60] sm:$0xff]  ;;  %v749_v13 = vpack.c.bf16 %v72_v5, %v71_v3  ;;  %v59_v19 = vld [vmem:[%s1321_s1 + $0xf0] sm:$0xff] }
  0x13   :  { %742 = vmatpush3.bf16.msra.mxu1 %v741_v51  ;;  %v42_v12 = vld [vmem:[%s1321_s1 + $0x68] sm:$0xff]  ;;  %v73_v15 = vld [vmem:[%s1321_s1 + $0x160] sm:$0xff]  ;;  %v751_v18 = vpack.c.bf16 %v90_v9, %v89_v8  ;;  %v60_v20 = vld [vmem:[%s1321_s1 + $0xf8] sm:$0xff] }
  0x14   :  { %744 = vmatprep.subr.bf16.mxu1 %v743_v56  ;;  %v74_v16 = vld [vmem:[%s1321_s1 + $0x168] sm:$0xff]  ;;  %v24_v21 = vld [vmem:[%s1320_s0 + $0x18] sm:$0xff]  ;;  %v91_v22 = vld [vmem:[%s1321_s1 + $0x1f0] sm:$0xff]  ;;  %v721_v24 = vpack.c.bf16 %v42_v12, %v41_v11  ;;  %v723_v26 = vpack.c.bf16 %v60_v20, %v59_v19 }
  0x15   :  { %714 = vmatpush3.bf16.msra.mxu0 %v713_v62  ;;  %v22_v17 = vld [vmem:[%s1320_s0 + $0x8] sm:$0xff]  ;;  %v92_v23 = vld [vmem:[%s1321_s1 + $0x1f8] sm:$0xff]  ;;  %298 = vmatprep.mubr.f32.mxu1 %v24_v21  ;;  %v753_v25 = vpack.c.bf16 %v74_v16, %v73_v15  ;;  %v43_v27 = vld [vmem:[%s1321_s1 + $0x70] sm:$0xff] }
  0x16   :  { %716 = vmatprep.subr.bf16.mxu0 %v715_v0  ;;  %228 = vmatprep.mubr.f32.mxu0 %v22_v17  ;;  %v44_v28 = vld [vmem:[%s1321_s1 + $0x78] sm:$0xff]  ;;  %v75_v29 = vld [vmem:[%s1321_s1 + $0x170] sm:$0xff]  ;;  %v755_v30 = vpack.c.bf16 %v92_v23, %v91_v22  ;;  %v109_v32 = vld [vmem:[%s1321_s1 + $0x280] sm:$0xff] }
  0x17   :  { %746 = vmatpush3.bf16.msra.mxu1 %v745_v63  ;;  %v76_v31 = vld [vmem:[%s1321_s1 + $0x178] sm:$0xff]  ;;  %v110_v33 = vld [vmem:[%s1321_s1 + $0x288] sm:$0xff]  ;;  %v141_v34 = vld [vmem:[%s1321_s1 + $0x380] sm:$0xff]  ;;  %v725_v36 = vpack.c.bf16 %v44_v28, %v43_v27 }
  0x18   :  { %748 = vmatprep.subr.bf16.mxu1 %v747_v4  ;;  %v142_v35 = vld [vmem:[%s1321_s1 + $0x388] sm:$0xff]  ;;  %v757_v37 = vpack.c.bf16 %v76_v31, %v75_v29  ;;  %v759_v38 = vpack.c.bf16 %v110_v33, %v109_v32  ;;  %v93_v39 = vld [vmem:[%s1321_s1 + $0x200] sm:$0xff]  ;;  %v111_v44 = vld [vmem:[%s1321_s1 + $0x290] sm:$0xff] }
  0x19   :  { %718 = vmatpush3.bf16.msra.mxu0 %v717_v10  ;;  %v94_v40 = vld [vmem:[%s1321_s1 + $0x208] sm:$0xff]  ;;  %v125_v41 = vld [vmem:[%s1321_s1 + $0x300] sm:$0xff]  ;;  %v791_v42 = vpack.c.bf16 %v142_v35, %v141_v34  ;;  %v112_v45 = vld [vmem:[%s1321_s1 + $0x298] sm:$0xff] }
  0x1a   :  { %720 = vmatprep.subr.bf16.mxu0 %v719_v14  ;;  %v126_v43 = vld [vmem:[%s1321_s1 + $0x308] sm:$0xff]  ;;  %v143_v46 = vld [vmem:[%s1321_s1 + $0x390] sm:$0xff]  ;;  %v144_v47 = vld [vmem:[%s1321_s1 + $0x398] sm:$0xff]  ;;  %v761_v49 = vpack.c.bf16 %v94_v40, %v93_v39  ;;  %v763_v52 = vpack.c.bf16 %v112_v45, %v111_v44 }
  0x1b   :  { %750 = vmatpush3.bf16.msra.mxu1 %v749_v13  ;;  %v21_v48 = vld [vmem:[%s1320_s0] sm:$0xff]  ;;  %v23_v50 = vld [vmem:[%s1320_s0 + $0x10] sm:$0xff]  ;;  %v793_v51 = vpack.c.bf16 %v126_v43, %v125_v41  ;;  %v96_v54 = vld [vmem:[%s1321_s1 + $0x218] sm:$0xff]  ;;  %v795_v56 = vpack.c.bf16 %v144_v47, %v143_v46 }
  0x1c   :  { %752 = vmatprep.subr.bf16.mxu1 %v751_v18  ;;  %v95_v53 = vld [vmem:[%s1321_s1 + $0x210] sm:$0xff]  ;;  %v128_v57 = vld [vmem:[%s1321_s1 + $0x318] sm:$0xff]  ;;  %v113_v58 = vld [vmem:[%s1321_s1 + $0x2a0] sm:$0xff] }
  0x1d   :  { %722 = vmatpush3.bf16.msra.mxu0 %v721_v24  ;;  %v127_v55 = vld [vmem:[%s1321_s1 + $0x310] sm:$0xff]  ;;  %v114_v59 = vld [vmem:[%s1321_s1 + $0x2a8] sm:$0xff]  ;;  %v145_v60 = vld [vmem:[%s1321_s1 + $0x3a0] sm:$0xff]  ;;  %v765_v62 = vpack.c.bf16 %v96_v54, %v95_v53 }
  0x1e   :  { %724 = vmatprep.subr.bf16.mxu0 %v723_v26  ;;  %v146_v61 = vld [vmem:[%s1321_s1 + $0x3a8] sm:$0xff]  ;;  %v797_v63 = vpack.c.bf16 %v128_v57, %v127_v55  ;;  %v767_v0 = vpack.c.bf16 %v114_v59, %v113_v58  ;;  %v97_v1 = vld [vmem:[%s1321_s1 + $0x220] sm:$0xff]  ;;  %v115_v6 = vld [vmem:[%s1321_s1 + $0x2b0] sm:$0xff] }
  0x1f   :  { %754 = vmatpush3.bf16.msra.mxu1 %v753_v25  ;;  %v98_v2 = vld [vmem:[%s1321_s1 + $0x228] sm:$0xff]  ;;  %v129_v3 = vld [vmem:[%s1321_s1 + $0x320] sm:$0xff]  ;;  %v799_v4 = vpack.c.bf16 %v146_v61, %v145_v60  ;;  %v116_v7 = vld [vmem:[%s1321_s1 + $0x2b8] sm:$0xff] }
  0x20   :  { %756 = vmatprep.subr.bf16.mxu1 %v755_v30  ;;  %v130_v5 = vld [vmem:[%s1321_s1 + $0x328] sm:$0xff]  ;;  %v147_v8 = vld [vmem:[%s1321_s1 + $0x3b0] sm:$0xff]  ;;  %v148_v9 = vld [vmem:[%s1321_s1 + $0x3b8] sm:$0xff]  ;;  %v769_v10 = vpack.c.bf16 %v98_v2, %v97_v1  ;;  %v771_v12 = vpack.c.bf16 %v116_v7, %v115_v6 }
  0x21   :  { %726 = vmatpush3.bf16.msra.mxu0 %v725_v36  ;;  %v801_v11 = vpack.c.bf16 %v130_v5, %v129_v3  ;;  %v99_v13 = vld [vmem:[%s1321_s1 + $0x230] sm:$0xff]  ;;  %v100_v14 = vld [vmem:[%s1321_s1 + $0x238] sm:$0xff]  ;;  %v803_v16 = vpack.c.bf16 %v148_v9, %v147_v8  ;;  %v117_v18 = vld [vmem:[%s1321_s1 + $0x2c0] sm:$0xff] }
  0x22   :  { %760 = vmatprep.subr.bf16.mxu0 %v759_v38  ;;  %v131_v15 = vld [vmem:[%s1321_s1 + $0x330] sm:$0xff]  ;;  %v132_v17 = vld [vmem:[%s1321_s1 + $0x338] sm:$0xff]  ;;  %v118_v19 = vld [vmem:[%s1321_s1 + $0x2c8] sm:$0xff]  ;;  %v773_v22 = vpack.c.bf16 %v100_v14, %v99_v13 }
  0x23   :  { %758 = vmatpush3.bf16.msra.mxu1 %v757_v37  ;;  %v149_v20 = vld [vmem:[%s1321_s1 + $0x3c0] sm:$0xff]  ;;  %v150_v21 = vld [vmem:[%s1321_s1 + $0x3c8] sm:$0xff]  ;;  %v28_v25 = vld [vmem:[%s1320_s0 + $0x38] sm:$0xff]  ;;  %v805_v26 = vpack.c.bf16 %v132_v17, %v131_v15  ;;  %v775_v27 = vpack.c.bf16 %v118_v19, %v117_v18 }
  0x24   :  { %792 = vmatprep.subr.bf16.mxu1 %v791_v42  ;;  %229 = vmatmul.mubr.f32.vlgmr.msra.gmra.mrb[0].mxu0 %v21_v48  ;;  %v101_v23 = vld [vmem:[%s1321_s1 + $0x240] sm:$0xff]  ;;  %v26_v24 = vld [vmem:[%s1320_s0 + $0x28] sm:$0xff] }
  0x25   :  { %762 = vmatpush3.bf16.msra.mxu0 %v761_v49  ;;  %v102_v28 = vld [vmem:[%s1321_s1 + $0x248] sm:$0xff]  ;;  %v133_v29 = vld [vmem:[%s1321_s1 + $0x340] sm:$0xff] }
  0x26   :  { %299 = vmatmul.mubr.f32.vlgmr.msra.gmra.mrb[0].mxu1 %v23_v50  ;;  %764 = vmatprep.subr.bf16.mxu0 %v763_v52 }
  0x27   :  { %794 = vmatpush3.bf16.msra.mxu1 %v793_v51 }
  0x28   :  { %796 = vmatprep.subr.bf16.mxu1 %v795_v56 }
  0x29   :  { %766 = vmatpush3.bf16.msra.mxu0 %v765_v62 }
  0x2a   :  { %768 = vmatprep.subr.bf16.mxu0 %v767_v0 }
  0x2b   :  { %798 = vmatpush3.bf16.msra.mxu1 %v797_v63 }
  0x2c   :  { %800 = vmatprep.subr.bf16.mxu1 %v799_v4 }
  0x2d   :  { %770 = vmatpush3.bf16.msra.mxu0 %v769_v10 }
  0x2e   :  { %772 = vmatprep.subr.bf16.mxu0 %v771_v12 }
  0x2f   :  { %802 = vmatpush3.bf16.msra.mxu1 %v801_v11 }
  0x30   :  { %10 = vsyncpa [#allocation3], 0  ;;  %804 = vmatprep.subr.bf16.mxu1 %v803_v16  ;;  %v807_v30 = vpack.c.bf16 %v150_v21, %v149_v20  ;;  %v134_v31 = vld [vmem:[%s1321_s1 + $0x348] sm:$0xff]  ;;  %v119_v32 = vld [vmem:[%s1321_s1 + $0x2d0] sm:$0xff]  ;;  %368 = vmatprep.mubr.f32.mxu0 %v26_v24  ;;  %v777_v36 = vpack.c.bf16 %v102_v28, %v101_v23  ;;  %v854_v11 = vmov 0.0|0.0   ;;  %vm855_vm0 = vmmov 0  }
  0x31   :  { %v120_v33 = vld [vmem:[%s1321_s1 + $0x2d8] sm:$0xff]  ;;  %v151_v34 = vld [vmem:[%s1321_s1 + $0x3d0] sm:$0xff]  ;;  %438 = vmatprep.mubr.f32.mxu1 %v28_v25  ;;  %774 = vmatpush3.bf16.msra.mxu0 %v773_v22  ;;  %v809_v37 = vpack.c.bf16 %v134_v31, %v133_v29  ;;  %v121_v44 = vld [vmem:[%s1321_s1 + $0x2e0] sm:$0xff]  ;;  %v856_v12 = vmov 0.0   ;;  %vm453_vm1 = vcmask 130048  }
  0x32   :  { %v152_v35 = vld [vmem:[%s1321_s1 + $0x3d8] sm:$0xff]  ;;  %776 = vmatprep.subr.bf16.mxu0 %v775_v27  ;;  %v779_v38 = vpack.c.bf16 %v120_v33, %v119_v32  ;;  %v103_v39 = vld [vmem:[%s1321_s1 + $0x250] sm:$0xff]  ;;  %v122_v45 = vld [vmem:[%s1321_s1 + $0x2e8] sm:$0xff] }
  0x33   :  { %806 = vmatpush3.bf16.msra.mxu1 %v805_v26  ;;  %v104_v40 = vld [vmem:[%s1321_s1 + $0x258] sm:$0xff]  ;;  %v135_v41 = vld [vmem:[%s1321_s1 + $0x350] sm:$0xff]  ;;  %v811_v42 = vpack.c.bf16 %v152_v35, %v151_v34  ;;  %v153_v46 = vld [vmem:[%s1321_s1 + $0x3e0] sm:$0xff]  ;;  %v783_v50 = vpack.c.bf16 %v122_v45, %v121_v44 }
  0x34   :  { %808 = vmatprep.subr.bf16.mxu1 %v807_v30  ;;  %v136_v43 = vld [vmem:[%s1321_s1 + $0x358] sm:$0xff]  ;;  %v154_v47 = vld [vmem:[%s1321_s1 + $0x3e8] sm:$0xff]  ;;  %v781_v48 = vpack.c.bf16 %v104_v40, %v103_v39  ;;  %v105_v51 = vld [vmem:[%s1321_s1 + $0x260] sm:$0xff] }
  0x35   :  { %778 = vmatpush3.bf16.msra.mxu0 %v777_v36  ;;  %v813_v49 = vpack.c.bf16 %v136_v43, %v135_v41  ;;  %v106_v52 = vld [vmem:[%s1321_s1 + $0x268] sm:$0xff]  ;;  %v137_v53 = vld [vmem:[%s1321_s1 + $0x360] sm:$0xff]  ;;  %v815_v54 = vpack.c.bf16 %v154_v47, %v153_v46  ;;  %v123_v56 = vld [vmem:[%s1321_s1 + $0x2f0] sm:$0xff] }
  0x36   :  { %780 = vmatprep.subr.bf16.mxu0 %v779_v38  ;;  %v138_v55 = vld [vmem:[%s1321_s1 + $0x368] sm:$0xff]  ;;  %v124_v57 = vld [vmem:[%s1321_s1 + $0x2f8] sm:$0xff]  ;;  %v155_v58 = vld [vmem:[%s1321_s1 + $0x3f0] sm:$0xff]  ;;  %v785_v60 = vpack.c.bf16 %v106_v52, %v105_v51 }
  0x37   :  { %810 = vmatpush3.bf16.msra.mxu1 %v809_v37  ;;  %v156_v59 = vld [vmem:[%s1321_s1 + $0x3f8] sm:$0xff]  ;;  %v817_v61 = vpack.c.bf16 %v138_v55, %v137_v53  ;;  %v787_v62 = vpack.c.bf16 %v124_v57, %v123_v56  ;;  %v107_v63 = vld [vmem:[%s1321_s1 + $0x270] sm:$0xff]  ;;  %v25_v6 = vld [vmem:[%s1320_s0 + $0x20] sm:$0xff] }
  0x38   :  { %812 = vmatprep.subr.bf16.mxu1 %v811_v42  ;;  %v108_v0 = vld [vmem:[%s1321_s1 + $0x278] sm:$0xff]  ;;  %v819_v1 = vpack.c.bf16 %v156_v59, %v155_v58  ;;  %v139_v2 = vld [vmem:[%s1321_s1 + $0x370] sm:$0xff]  ;;  %v444_v8 = vld [vmem:[%s1323_s3] sm:$0xff] }
  0x39   :  { %782 = vmatpush3.bf16.msra.mxu0 %v781_v48  ;;  %v140_v3 = vld [vmem:[%s1321_s1 + $0x378] sm:$0xff]  ;;  %v789_v4 = vpack.c.bf16 %v108_v0, %v107_v63  ;;  %v27_v7 = vld [vmem:[%s1320_s0 + $0x30] sm:$0xff]  ;;  %v445_v9 = vld [vmem:[%s1323_s3 + $0x8] sm:$0xff] }
  0x3a   :  { %784 = vmatprep.subr.bf16.mxu0 %v783_v50  ;;  %v821_v5 = vpack.c.bf16 %v140_v3, %v139_v2  ;;  %v824_v10 = vpack.c.bf16 %v445_v9, %v444_v8  ;;  %v542_v14 = vld [vmem:[%s1322_s2] ss:$0 sm:$0xff]  ;;  %s857_s2 = smov [#allocation2]  }
  0x3b   :  { %814 = vmatpush3.bf16.msra.mxu1 %v813_v49  ;;  %v543_v30 = vld [vmem:[%s1324_s4] ss:$0 sm:$0xff]  ;;  %s534_s20 = sshll.u32 %s857_s2, 4  ;;  %s535_s20 = int_to_ptr.vmem [resolvable:$true] %s534_s20 }
  0x3c   :  { %816 = vmatprep.subr.bf16.mxu1 %v815_v54  ;;  %s830_s21 = scalar_lea.vmem %s535_s20, 128  ;;  %p835_p1 = scmp.lt.s32.totalorder %s535_s20, %s535_s20 }
  0x3d   :  { %786 = vmatpush3.bf16.msra.mxu0 %v785_v60  ;;  %p831_p0 = scmp.ne.s32.totalorder %s535_s20, %s830_s21  ;;  %p836_p2 = scmp.lt.s32.totalorder %s830_s21, %s830_s21 }
  0x3e   :  { %788 = vmatprep.subr.bf16.mxu0 %v787_v62 }
  0x3f   :  { %818 = vmatpush3.bf16.msra.mxu1 %v817_v61  ;;  %p837_p3 = por %p836_p2, %p835_p1 }
  0x40   :  { %820 = vmatprep.subr.bf16.mxu1 %v819_v1 }
  0x41   :  { %790 = vmatpush3.bf16.msra.mxu0 %v789_v4  ;;  %p838_p4 = pnand %p837_p3, %p831_p0 }
  0x42   :  { %823 = vmatprep.subr.bf16.mxu0 %v854_v11 }
  0x43   :  { %822 = vmatpush3.bf16.msra.mxu1 %v821_v5 }
  0x44   :  { %369 = vmatmul.mubr.f32.vlgmr.msra.gmra.mrb[2].mxu0 %v25_v6 }
  0x45   :  { %825 = vmatpush3.bf16.msra.mxu0 %v824_v10  ;;  %692 = vmatprep.mubr.msk.f32.mxu0 %vm855_vm0, %v856_v12 }
  0x46   :  { %439 = vmatmul.mubr.f32.vlgmr.msra.gmra.mrb[2].mxu1 %v27_v7 }
  0xf7   :  { %v577_v13 = vpop.f32.mrb[0].mxu0 }
  0xf8   :  { %v578_v15 = vpop.f32.mrb[1].mxu0 }
  0xf9   :  { %v612_v16 = vpop.f32.mrb[0].mxu1  ;;  %v579_v17 = vadd.f32 %v578_v15, %v577_v13 }
  0xfa   :  { %v613_v18 = vpop.f32.mrb[1].mxu1 }
  0xfb   :  { %v614_v19 = vadd.f32 %v613_v18, %v612_v16  ;;  %v231_v20 = vadd.f32 %v579_v17, %v542_v14 }
  0xfd   :  { %v301_v21 = vadd.f32 %v614_v19, %v231_v20 }
 0x117   :  { %v647_v22 = vpop.f32.mrb[2].mxu0 }
 0x118   :  { %v648_v23 = vpop.f32.mrb[3].mxu0 }
 0x119   :  { %v682_v24 = vpop.f32.mrb[2].mxu1  ;;  %v649_v25 = vadd.f32 %v648_v23, %v647_v22 }
 0x11a   :  { %v683_v26 = vpop.f32.mrb[3].mxu1 }
 0x11b   :  { %v684_v27 = vadd.f32 %v683_v26, %v682_v24  ;;  %v371_v28 = vadd.f32 %v649_v25, %v301_v21 }
 0x11d   :  { %v441_v29 = vadd.f32 %v684_v27, %v371_v28 }
 0x11f   :  { %693 = vmatmul.mubr.msk.f32.vlgmr.msra.gmra.mrb[4].mxu0 %vm453_vm1, %v441_v29 }
 0x1f2   :  { %v523_v31 = vpop.f32.mrb[4].mxu0 }
 0x1f3   :  { %v524_v32 = vadd.f32 %v543_v30, %v523_v31  ;;  %v694_v33 = vpop.f32.mrb[5].mxu0 }
 0x1f5   :  { %527 = vst [vmem:[#allocation2] sm:$0xff] %v524_v32 }
 0x1f6   :  { %841 = shalt.err (!%p838_p4)
}
 0x1f7   :  { %s842_s24 = scalar_lea.hbm %s1325_s5, 128 }
 0x1f8   :  { %p843_p5 = scmp.ne.s32.totalorder %s1325_s5, %s842_s24  ;;  %p846_p6 = scmp.lt.u32.totalorder %s842_s24, %s1325_s5 }
 0x1fa   :  { %p848_p7 = pnand %p846_p6, %p843_p5 }
 0x1fc   :  { %851 = shalt.err (!%p848_p7)
}
 0x1fd   :  { %537 = dma.vmem_to_hbm [thread:$0]  %s535_s20, 128, %s1325_s5, [#allocation3]  }
 0x1fe   :  { %852 = dma.done.wait [#allocation3], 128  }
 0x1ff   :  { %853 = vsyncadd [#allocation3], 4294967168 }
 0x200   :  { %541 = vsyncpa [#allocation3], 1 }

</bundles_post_ra>
